<compile_context>
chip_gen: v7x
topology: tpu7x:2x2x1
jax: 0.10.0
libtpu: 0.0.40
codegen_flags: <defaults>
</compile_context>

<pallas_src>
import jax
import jax.numpy as jnp
from jax.experimental import pallas as pl
from jax.experimental.pallas import tpu as pltpu


def _round_up(n, m):
    return ((n + m - 1) // m) * m


def _choose_tile_rows(nc, hw, itemsize):
    """Pick the row-tile size from a VMEM byte budget (v7x-safe)."""
    # Per row of a tile we hold: 2 double-buffered input rows (native dtype)
    # plus ~2 f32 temporaries (exp result / fused products).
    per_row = hw * (2 * itemsize + 2 * 4)
    budget = 24 * 1024 * 1024          # fits v7x's 64 MiB physical VMEM easily
    tm = budget // per_row
    tm = max(8, (tm // 8) * 8)         # sublane multiple
    tm = min(tm, 2048)                 # diminishing returns past ~2K rows
    nc8 = _round_up(nc, 8)
    tm = min(tm, nc8)
    # Make sure the "parallel" grid axis has >= 2 steps when NC allows it, so
    # v7x's two TensorCores both get work (and the pipeline actually overlaps).
    if nc8 >= 16 and pl.cdiv(nc, tm) < 2:
        tm = max(8, _round_up(pl.cdiv(nc, 2), 8))
    return tm


def _spat_softargmax_kernel(x_ref, coords_ref, out_ref):
    # x_ref:      (TM, HW)  native dtype -- flattened feature rows (tile)
    # coords_ref: (2,  HW)  float32      -- row 0 = x_map, row 1 = y_map
    # out_ref:    (TM, 2)   float32      -- (expected_x, expected_y) per row
    x = x_ref[...]

    # Row max in the native dtype (exact -- max just selects an element), then
    # cast only the exp operand to f32.  Numerically stable softmax numerator.
    m = jnp.max(x, axis=-1, keepdims=True)                       # (TM, 1)
    p = jnp.exp(x.astype(jnp.float32) - m.astype(jnp.float32))   # (TM, HW) f32

    x_map = coords_ref[0:1, :]                                   # (1, HW)
    y_map = coords_ref[1:2, :]                                    # (1, HW)

    # Pure VPU multiplies + XLU lane reductions (MXU stays idle).
    denom = jnp.sum(p, axis=-1, keepdims=True)                    # (TM, 1)
    num_x = jnp.sum(p * x_map, axis=-1, keepdims=True)            # (TM, 1)
    num_y = jnp.sum(p * y_map, axis=-1, keepdims=True)            # (TM, 1)

    # Exact divide on the tiny (TM, 1) path (keeps the 1e-5 accuracy; do NOT
    # swap for pl.reciprocal(approx=True)).
    inv = 1.0 / denom
    out_ref[...] = jnp.concatenate([num_x * inv, num_y * inv], axis=-1)


def spat_soft_arg_max(x):
    """x: (N, C, H, W) -> (N, C, 2), matching the PyTorch SpatSoftArgMax."""
    N, C, H, W = x.shape
    NC, HW = N * C, H * W

    # Coordinate maps (glue, plain JAX), identical to the PyTorch loops:
    #   x_map[i, j] = (i - H/2) / H ,  y_map[i, j] = (j - W/2) / W
    row_ids = jax.lax.broadcasted_iota(jnp.float32, (H, W), 0)
    col_ids = jax.lax.broadcasted_iota(jnp.float32, (H, W), 1)
    x_map = ((row_ids - H / 2.0) / H).reshape(HW)
    y_map = ((col_ids - W / 2.0) / W).reshape(HW)
    coords = jnp.stack([x_map, y_map], axis=0)          # (2, HW), lane-dense

    # Keep the feature stream in its native dtype (bf16 stays bf16 -> half the
    # HBM bytes); the kernel up-casts inside the exp only.
    feats = x.reshape(NC, HW)

    tm = _choose_tile_rows(NC, HW, feats.dtype.itemsize)
    grid = (pl.cdiv(NC, tm),)   # no wrapper-side padding; Pallas masks the tail

    out = pl.pallas_call(
        _spat_softargmax_kernel,
        out_shape=jax.ShapeDtypeStruct((NC, 2), jnp.float32),
        grid=grid,
        in_specs=[
            # Feature rows: tiled along NC, pipelined/double-buffered.
            pl.BlockSpec((tm, HW), lambda i: (i, 0)),
            # Coordinate table: constant index_map -> stays VMEM-resident.
            pl.BlockSpec((2, HW), lambda i: (0, 0)),
        ],
        out_specs=pl.BlockSpec((tm, 2), lambda i: (i, 0)),
        compiler_params=pltpu.CompilerParams(
            # Rows are fully independent -> parallel (shards across v7x cores).
            dimension_semantics=("parallel",),
            vmem_limit_bytes=48 * 1024 * 1024,
        ),
        cost_estimate=pl.CostEstimate(
            flops=8 * NC * HW,
            transcendentals=NC * HW,
            bytes_accessed=NC * HW * feats.dtype.itemsize
            + 2 * HW * 4
            + NC * 2 * 4,
        ),
    )(feats, coords)

    return out.reshape(N, C, 2)


def _reference(x):
    """Pure-JAX reference reproducing the PyTorch forward exactly."""
    N, C, H, W = x.shape
    HW = H * W
    row_ids = jax.lax.broadcasted_iota(jnp.float32, (H, W), 0)
    col_ids = jax.lax.broadcasted_iota(jnp.float32, (H, W), 1)
    x_map = ((row_ids - H / 2.0) / H).reshape(1, 1, HW)
    y_map = ((col_ids - W / 2.0) / W).reshape(1, 1, HW)
    feats = x.reshape(N, C, HW).astype(jnp.float32)
    sm = jax.nn.softmax(feats, axis=-1)
    fp_x = jnp.sum(x_map * sm, axis=-1)
    fp_y = jnp.sum(y_map * sm, axis=-1)
    return jnp.stack([fp_x, fp_y], axis=-1)


if __name__ == "__main__":
    k1, k2 = jax.random.split(jax.random.PRNGKey(0))

    # Primary test shape (matches the module's NCHW contract).
    x = jax.random.normal(k1, (2, 4, 16, 16), dtype=jnp.float32)
    out = jax.block_until_ready(spat_soft_arg_max(x))
    ref = jax.block_until_ready(_reference(x))
    assert out.shape == (2, 4, 2), out.shape
    assert jnp.allclose(out, ref, atol=1e-5, rtol=1e-5), "mismatch vs reference"

    # Second shape: NC=15 -> exercises the un-padded partial last row-block and
    # the grid>=2 path (two grid steps of 8 rows).
    x2 = jax.random.normal(k2, (3, 5, 16, 16), dtype=jnp.float32)
    out2 = jax.block_until_ready(spat_soft_arg_max(x2))
    ref2 = jax.block_until_ready(_reference(x2))
    assert out2.shape == (3, 5, 2), out2.shape
    assert jnp.allclose(out2, ref2, atol=1e-5, rtol=1e-5), "mismatch vs reference (partial block)"

    print("KERNEL_OK")
</pallas_src>

<mosaic_0001>
module attributes {stable_mosaic.version = 11 : i64} {
  func.func @_spat_softargmax_kernel(%arg0: i32, %arg1: memref<8x256xf32, #tpu.memory_space<vmem>>, %arg2: memref<2x256xf32, #tpu.memory_space<vmem>>, %arg3: memref<8x2xf32, #tpu.memory_space<vmem>>) attributes {dimension_semantics = [#tpu.dimension_semantics<parallel>], iteration_bounds = array<i64: 1>, scalar_prefetch = 0 : i64, scratch_operands = 0 : i64, tpu.core_type = #tpu.core_type<tc>, window_params = [{transform_indices = @transform_0, window_bounds = array<i64: 8, 256>}, {pipeline_mode = #tpu.pipeline_mode<synchronous>, transform_indices = @transform_1, window_bounds = array<i64: 2, 256>}, {transform_indices = @transform_2, window_bounds = array<i64: 8, 2>}]} {
    %c0 = arith.constant 0 : index
    %c0_0 = arith.constant 0 : index
    %0 = vector.load %arg1[%c0, %c0_0] : memref<8x256xf32, #tpu.memory_space<vmem>>, vector<8x256xf32>
    %cst = arith.constant dense<0xFF800000> : vector<8xf32>
    %1 = vector.multi_reduction <maximumf>, %0, %cst [1] : vector<8x256xf32> to vector<8xf32>
    %2 = vector.shape_cast %1 : vector<8xf32> to vector<8x1xf32>
    %3 = vector.broadcast %2 : vector<8x1xf32> to vector<8x256xf32>
    %4 = arith.subf %0, %3 : vector<8x256xf32>
    %5 = math.exp %4 : vector<8x256xf32>
    %c0_1 = arith.constant 0 : index
    %c0_2 = arith.constant 0 : index
    %6 = vector.load %arg2[%c0_1, %c0_2] : memref<2x256xf32, #tpu.memory_space<vmem>>, vector<1x256xf32>
    %c1 = arith.constant 1 : index
    %c0_3 = arith.constant 0 : index
    %7 = vector.load %arg2[%c1, %c0_3] : memref<2x256xf32, #tpu.memory_space<vmem>>, vector<1x256xf32>
    %cst_4 = arith.constant dense<0.000000e+00> : vector<8xf32>
    %8 = vector.multi_reduction <add>, %5, %cst_4 [1] : vector<8x256xf32> to vector<8xf32>
    %9 = vector.shape_cast %8 : vector<8xf32> to vector<8x1xf32>
    %10 = vector.broadcast %6 : vector<1x256xf32> to vector<8x256xf32>
    %11 = arith.mulf %5, %10 : vector<8x256xf32>
    %cst_5 = arith.constant dense<0.000000e+00> : vector<8xf32>
    %12 = vector.multi_reduction <add>, %11, %cst_5 [1] : vector<8x256xf32> to vector<8xf32>
    %13 = vector.shape_cast %12 : vector<8xf32> to vector<8x1xf32>
    %14 = vector.broadcast %7 : vector<1x256xf32> to vector<8x256xf32>
    %15 = arith.mulf %5, %14 : vector<8x256xf32>
    %cst_6 = arith.constant dense<0.000000e+00> : vector<8xf32>
    %16 = vector.multi_reduction <add>, %15, %cst_6 [1] : vector<8x256xf32> to vector<8xf32>
    %17 = vector.shape_cast %16 : vector<8xf32> to vector<8x1xf32>
    %cst_7 = arith.constant 1.000000e+00 : f32
    %18 = vector.broadcast %cst_7 : f32 to vector<8x1xf32>
    %19 = arith.divf %18, %9 : vector<8x1xf32>
    %20 = arith.mulf %13, %19 : vector<8x1xf32>
    %21 = arith.mulf %17, %19 : vector<8x1xf32>
    %22 = tpu.concatenate %20, %21 in 1 : vector<8x1xf32>, vector<8x1xf32> -> vector<8x2xf32>
    %c0_8 = arith.constant 0 : index
    %c0_9 = arith.constant 0 : index
    %23 = vector.load %arg3[%c0_8, %c0_9] : memref<8x2xf32, #tpu.memory_space<vmem>>, vector<8x2xf32>
    tpu.vector_store %arg3[%c0_8, %c0_9], %22 {strides = array<i32>} : memref<8x2xf32, #tpu.memory_space<vmem>>, vector<8x2xf32>,
    return
  }
  func.func @transform_0(%arg0: i32) -> (i32, i32) {
    %c0_i32 = arith.constant 0 : i32
    %c0_i32_0 = arith.constant 0 : i32
    return %arg0, %c0_i32 : i32, i32
  }
  func.func @transform_1(%arg0: i32) -> (i32, i32) {
    %c0_i32 = arith.constant 0 : i32
    %c0_i32_0 = arith.constant 0 : i32
    %c0_i32_1 = arith.constant 0 : i32
    return %c0_i32, %c0_i32_0 : i32, i32
  }
  func.func @transform_2(%arg0: i32) -> (i32, i32) {
    %c0_i32 = arith.constant 0 : i32
    %c0_i32_0 = arith.constant 0 : i32
    return %arg0, %c0_i32 : i32, i32
  }
}

</mosaic_0001>

<bundles_post_ra>
// kernel: tpu_custom_call.1
= control target key start
LH: loop header
LB: loop body
LE: loop exit
PB: predicated region body
PF: predicated region fallthrough
CT: control target
= control target key end

     0   :  { %7 = vsyncpa [#allocation3], 0  ;;  %s198_s0 = inlined_call_operand.hbm [shape: f32[8,256], index: 0, kind: input, shape index: {}]   ;;  %s199_s1 = inlined_call_operand.hbm [shape: f32[2,256], index: 1, kind: input, shape index: {}]   ;;  %s200_s2 = inlined_call_operand.vmem [shape: f32[8,2], index: 2, kind: output, shape index: {}]  }
   0x1   :  { %8 = vsyncpa [#allocation5], 0  ;;  %s154_s9 = smov [#allocation2]   ;;  %s155_s11 = smov [#allocation4]  }
   0x2   :  { %s15_s10 = sshll.u32 %s154_s9, 4  ;;  %s25_s12 = sshll.u32 %s155_s11, 4  ;;  %s16_s10 = int_to_ptr.vmem [resolvable:$true] %s15_s10  ;;  %s26_s12 = int_to_ptr.vmem [resolvable:$true] %s25_s12 }
   0x3   :  { %s106_s15 = scalar_lea.hbm %s198_s0, 256 }
   0x4   :  { %p107_p0 = scmp.ne.s32.totalorder %s198_s0, %s106_s15  ;;  %p110_p1 = scmp.lt.u32.totalorder %s106_s15, %s198_s0 }
   0x6   :  { %p112_p2 = pnand %p110_p1, %p107_p0 }
   0x8   :  { %115 = shalt.err (!%p112_p2)
}
   0x9   :  { %s116_s20 = scalar_lea.vmem %s16_s10, 256  ;;  %p121_p4 = scmp.lt.s32.totalorder %s16_s10, %s16_s10 }
   0xa   :  { %p117_p3 = scmp.ne.s32.totalorder %s16_s10, %s116_s20  ;;  %p122_p5 = scmp.lt.s32.totalorder %s116_s20, %s116_s20 }
   0xc   :  { %p123_p6 = por %p122_p5, %p121_p4 }
   0xe   :  { %p124_p7 = pnand %p123_p6, %p117_p3 }
  0x10   :  { %127 = shalt.err (!%p124_p7)
}
  0x11   :  { %18 = dma.hbm_to_vmem [thread:$0]  %s198_s0, 256, %s16_s10, [#allocation3]  }
  0x12   :  { %s128_s25 = scalar_lea.hbm %s199_s1, 64 }
  0x13   :  { %p129_p8 = scmp.ne.s32.totalorder %s199_s1, %s128_s25  ;;  %p132_p9 = scmp.lt.u32.totalorder %s128_s25, %s199_s1 }
  0x15   :  { %p134_p10 = pnand %p132_p9, %p129_p8 }
  0x17   :  { %137 = shalt.err (!%p134_p10)
}
  0x18   :  { %s138_s30 = scalar_lea.vmem %s26_s12, 64  ;;  %p143_p12 = scmp.lt.s32.totalorder %s26_s12, %s26_s12 }
  0x19   :  { %p139_p11 = scmp.ne.s32.totalorder %s26_s12, %s138_s30  ;;  %p144_p13 = scmp.lt.s32.totalorder %s138_s30, %s138_s30 }
  0x1b   :  { %p145_p0 = por %p144_p13, %p143_p12 }
  0x1d   :  { %p146_p1 = pnand %p145_p0, %p139_p11 }
  0x1f   :  { %149 = shalt.err (!%p146_p1)
}
  0x20   :  { %28 = dma.hbm_to_vmem [thread:$0]  %s199_s1, 64, %s26_s12, [#allocation5]  }
  0x21   :  { %150 = dma.done.wait [#allocation3], 256  }
  0x22   :  { %151 = vsyncadd [#allocation3], 4294967040 }
  0x23   :  { %152 = dma.done.wait [#allocation5], 64  }
  0x24   :  { %153 = vsyncadd [#allocation5], 4294967232  ;;  %v35_v0 = vld [vmem:[#allocation2] sm:$0xff]  ;;  %v36_v1 = vld [vmem:[#allocation2 + $0x8] sm:$0xff]  ;;  %v53_v4 = vlaneseq  ;;  %vm88_vm0 = vcmask 7168   ;;  %vm90_vm1 = vcmask 15360  }
  0x25   :  { %v37_v2 = vmax.f32 %v35_v0, %v36_v1  ;;  %v46_v11 = vld [vmem:[#allocation4] ss:$2 sm:$0x3]  ;;  %v48_v14 = vld [vmem:[#allocation4 + $0x1] ss:$2 sm:$0x3] }
  0x26   :  { %v54_v9 = vshrl.u32 %v53_v4, 7 }
  0x27   :  { %38 = vmax.xlane.f32.xlu0 %v37_v2 }
  0x28   :  { %v55_v10 = vsub.s32 0, %v54_v9  ;;  %v59_v12 = vsub.s32 1, %v54_v9 }
  0x2a   :  { %v56_v13 = vrot.slane %v46_v11, %v55_v10  ;;  %v60_v15 = vrot.slane %v46_v11, %v59_v12  ;;  %v72_v17 = vrot.slane %v48_v14, %v55_v10  ;;  %v76_v18 = vrot.slane %v48_v14, %v59_v12 }
  0xb4   :  { %v39_v3 = vpop.xlane.xlu0 %38 }
  0xb5   :  { %v40_v5 = vsub.f32 %v35_v0, %v39_v3  ;;  %v41_v6 = vsub.f32 %v36_v1, %v39_v3 }
  0xb7   :  { %v42_v7 = vmul.f32 1.442695, %v40_v5  ;;  %v44_v8 = vmul.f32 1.442695, %v41_v6 }
  0xb9   :  { %100 = vpow2.f32 %v42_v7 }
  0xba   :  { %102 = vpow2.f32 %v44_v8 }
  0xc3   :  { %v101_v16 = vpop.eup %100 }
  0xc4   :  { %v103_v19 = vpop.eup %102  ;;  %v63_v20 = vmul.f32 %v101_v16, %v56_v13  ;;  %v79_v24 = vmul.f32 %v101_v16, %v72_v17 }
  0xc5   :  { %v49_v21 = vadd.f32 %v103_v19, %v101_v16  ;;  %v64_v22 = vmul.f32 %v103_v19, %v60_v15  ;;  %v80_v25 = vmul.f32 %v103_v19, %v76_v18 }
  0xc7   :  { %50 = vadd.xlane.f32.xlu0 %v49_v21  ;;  %v65_v23 = vadd.f32 %v64_v22, %v63_v20  ;;  %v81_v26 = vadd.f32 %v80_v25, %v79_v24 }
  0xc9   :  { %66 = vadd.xlane.f32.xlu1 %v65_v23 }
  0xcd   :  { %82 = vadd.xlane.f32.xlu1 %v81_v26 }
 0x154   :  { %v51_v27 = vpop.xlane.xlu0 %50 }
 0x155   :  { %104 = vrcp.f32 %v51_v27 }
 0x156   :  { %v67_v28 = vpop.xlane.xlu1 %66 }
 0x15a   :  { %v83_v30 = vpop.xlane.xlu1 %82 }
 0x15f   :  { %v105_v29 = vpop.eup %104 }
 0x160   :  { %v86_v31 = vmul.f32 %v105_v29, %v67_v28  ;;  %v87_v32 = vmul.f32 %v105_v29, %v83_v30 }
 0x162   :  { %v89_v33 = vsel %vm88_vm0, %v86_v31, %v87_v32 }
 0x163   :  { %91 = vst.msk [vmem:[%s200_s2] sm:$0xff] %vm90_vm1, %v89_v33 }
 0x164   :  { %96 = vsyncpa [#allocation3], 1 }
 0x165   :  { %97 = vsyncpa [#allocation5], 1 }

</bundles_post_ra>
